<compile_context>
chip_gen: v7x
topology: tpu7x:2x2x1
jax: 0.10.0
libtpu: 0.0.40
codegen_flags: <defaults>
</compile_context>

<pallas_src>
import functools

import jax
import jax.numpy as jnp
from jax.experimental import pallas as pl
from jax.experimental.pallas import tpu as pltpu

_VMEM_LIMIT_CACHE = None


def _vmem_limit():
    """Generation-aware VMEM budget (v5e/v6e: 128 MiB, v7x: 64 MiB per TC)."""
    global _VMEM_LIMIT_CACHE
    if _VMEM_LIMIT_CACHE is None:
        try:
            cap = int(pltpu.get_tpu_info().vmem_capacity_bytes)
        except Exception:
            cap = 64 * 1024 * 1024          # conservative (v7x) fallback
        _VMEM_LIMIT_CACHE = min((cap * 3) // 4, 100 * 1024 * 1024)
    return _VMEM_LIMIT_CACHE


def _vmem():
    return pl.BlockSpec(memory_space=pltpu.MemorySpace.VMEM)


def _cparams(semantics):
    return pltpu.CompilerParams(dimension_semantics=semantics,
                                vmem_limit_bytes=_vmem_limit())


def _pick_tile(dim, target, mults=(256, 128)):
    """Largest divisor of `dim` that is <= target and a multiple of a preferred
    alignment (256 first for v6e/v7x MXU cadence, then 128); falls back to the
    full dim (always BlockSpec-legal)."""
    cap = min(dim, target)
    for mult in mults:
        t = cap - (cap % mult)
        while t >= mult:
            if dim % t == 0:
                return t
            t -= mult
    return dim


# --------------------------- Pallas kernels ---------------------------------

def _linear_kernel(x_ref, w_ref, b_ref, o_ref, acc_ref, *, act):
    """Tiled matmul + bias (+ activation). Grid = (M/tm, N/tn, K/tk). bf16 in/out."""
    k = pl.program_id(2)

    @pl.when(k == 0)
    def _():
        acc_ref[...] = jnp.zeros(acc_ref.shape, jnp.float32)

    acc_ref[...] += jnp.dot(x_ref[...], w_ref[...],
                            preferred_element_type=jnp.float32)

    @pl.when(k == pl.num_programs(2) - 1)
    def _():
        h = acc_ref[...] + b_ref[...]
        if act == "gelu":
            # TODO(synk): HF LayoutLM uses exact (erf) gelu; tanh approximation
            # keeps the epilogue on well-supported EUP ops (small drift).
            h = jax.nn.gelu(h, approximate=True)
        elif act == "tanh":
            h = jnp.tanh(h)
        o_ref[...] = h.astype(o_ref.dtype)


def _qkv_kernel(x_ref, w_ref, b_ref, o_ref, acc_ref):
    """Fused QKV projection writing a (3, M, H) slab. Grid = (M/tm, 3H/tn, K/tk)."""
    k = pl.program_id(2)

    @pl.when(k == 0)
    def _():
        acc_ref[...] = jnp.zeros(acc_ref.shape, jnp.float32)

    acc_ref[...] += jnp.dot(x_ref[...], w_ref[...],
                            preferred_element_type=jnp.float32)

    @pl.when(k == pl.num_programs(2) - 1)
    def _():
        o_ref[0] = (acc_ref[...] + b_ref[...]).astype(o_ref.dtype)


def _linear_res_ln_kernel(x_ref, w_ref, b_ref, r_ref, g_ref, bt_ref, o_ref,
                          acc_ref, *, eps):
    """Tiled matmul + bias + residual add + LayerNorm epilogue.

    Grid = (M/tm, K/tk); the full feature dim N stays in one tile so the LN
    row reduction sees the whole row.
    """
    k = pl.program_id(1)

    @pl.when(k == 0)
    def _():
        acc_ref[...] = jnp.zeros(acc_ref.shape, jnp.float32)

    acc_ref[...] += jnp.dot(x_ref[...], w_ref[...],
                            preferred_element_type=jnp.float32)

    @pl.when(k == pl.num_programs(1) - 1)
    def _():
        h = acc_ref[...] + b_ref[...] + r_ref[...].astype(jnp.float32)
        mu = jnp.mean(h, axis=-1, keepdims=True)
        var = jnp.mean((h - mu) ** 2, axis=-1, keepdims=True)
        y = (h - mu) * jax.lax.rsqrt(var + eps) * g_ref[...] + bt_ref[...]
        o_ref[...] = y.astype(o_ref.dtype)


def _layernorm_kernel(x_ref, g_ref, b_ref, o_ref, *, eps):
    x = x_ref[...].astype(jnp.float32)
    mu = jnp.mean(x, axis=-1, keepdims=True)
    var = jnp.mean((x - mu) ** 2, axis=-1, keepdims=True)
    y = (x - mu) * jax.lax.rsqrt(var + eps) * g_ref[...] + b_ref[...]
    o_ref[...] = y.astype(o_ref.dtype)


def _flash_mha_kernel(lens_ref, q_ref, k_ref, v_ref, mb_ref, o_ref,
                      m_sc, l_sc, acc_sc, *, dh):
    """Flash-attention forward with online softmax over a QKV slab.

    Grid = (B, head_groups, S/tq, S/tk).  Q/K/V blocks are (tq|tk, dhb) column
    slices of the (3, B*S, H) QKV slab (dhb = 128 lanes or full H), so no XLA
    transpose is needed on either side; the output is written lane-dense into
    (B*S, H).  Fully padded KV tiles are skipped via the prefetched per-batch
    valid length.  1/sqrt(dh) is pre-folded into Wq.
    """
    b = pl.program_id(0)
    ki = pl.program_id(3)
    nk = pl.num_programs(3)
    tk = k_ref.shape[1]
    hpb = q_ref.shape[2] // dh          # heads per block

    @pl.when(ki == 0)
    def _():
        m_sc[...] = jnp.full(m_sc.shape, -jnp.inf, jnp.float32)
        l_sc[...] = jnp.zeros(l_sc.shape, jnp.float32)
        acc_sc[...] = jnp.zeros(acc_sc.shape, jnp.float32)

    @pl.when(ki * tk < lens_ref[b])     # skip fully-padded KV tiles
    def _():
        qb = q_ref[0]                   # (tq, dhb) bf16
        kb = k_ref[0]                   # (tk, dhb) bf16
        vb = v_ref[0]                   # (tk, dhb) bf16
        mbias = mb_ref[0]               # (1, tk)  f32 additive pad mask
        for h in range(hpb):
            sl = slice(h * dh, (h + 1) * dh)
            s = jax.lax.dot_general(qb[:, sl], kb[:, sl],
                                    (((1,), (1,)), ((), ())),
                                    preferred_element_type=jnp.float32)
            s = s + mbias
            m_prev = m_sc[h]
            m_new = jnp.maximum(m_prev, jnp.max(s, axis=-1, keepdims=True))
            alpha = jnp.exp(m_prev - m_new)
            p = jnp.exp(s - m_new)
            l_sc[h] = alpha * l_sc[h] + jnp.sum(p, axis=-1, keepdims=True)
            pv = jnp.dot(p.astype(jnp.bfloat16), vb[:, sl],
                         preferred_element_type=jnp.float32)
            acc_sc[:, sl] = alpha * acc_sc[:, sl] + pv
            m_sc[h] = m_new

    @pl.when(ki == nk - 1)
    def _():
        parts = []
        for h in range(hpb):
            inv = pl.reciprocal(l_sc[h], approx=True)          # (tq, 1)
            parts.append(acc_sc[:, h * dh:(h + 1) * dh] * inv)
        o_ref[...] = jnp.concatenate(parts, axis=-1).astype(o_ref.dtype)


def _tail_kernel(x_ref, wp_ref, bp_ref, wc_ref, bc_ref, oh_ref,
                 logits_ref, loss_ref):
    """Fused pooler(tanh) + classifier + softmax cross-entropy (cold path)."""
    x = x_ref[...].astype(jnp.float32)
    pooled = jnp.tanh(jnp.dot(x, wp_ref[...],
                              preferred_element_type=jnp.float32) + bp_ref[...])
    logits = jnp.dot(pooled, wc_ref[...],
                     preferred_element_type=jnp.float32) + bc_ref[...]
    logits_ref[...] = logits
    m = jnp.max(logits, axis=-1, keepdims=True)
    lse = jnp.log(jnp.sum(jnp.exp(logits - m), axis=-1, keepdims=True)) + m
    nll = -jnp.sum(oh_ref[...] * (logits - lse), axis=-1, keepdims=True)  # (B,1)
    loss_ref[...] = jnp.mean(nll, axis=0, keepdims=True)                  # (1,1)


# --------------------------- kernel wrappers ---------------------------------

def pl_linear(x, w, b, act="none", tm_target=512, tn_target=512, tk_target=768):
    M, K = x.shape
    N = w.shape[1]
    tm = _pick_tile(M, tm_target, (8,))
    tn = _pick_tile(N, tn_target)
    tk = _pick_tile(K, tk_target)
    grid = (M // tm, N // tn, K // tk)
    return pl.pallas_call(
        functools.partial(_linear_kernel, act=act),
        out_shape=jax.ShapeDtypeStruct((M, N), jnp.bfloat16),
        grid_spec=pltpu.PrefetchScalarGridSpec(
            num_scalar_prefetch=0, grid=grid,
            in_specs=[
                pl.BlockSpec((tm, tk), lambda i, j, k: (i, k)),
                pl.BlockSpec((tk, tn), lambda i, j, k: (k, j)),
                pl.BlockSpec((1, tn), lambda i, j, k: (0, j)),
            ],
            out_specs=pl.BlockSpec((tm, tn), lambda i, j, k: (i, j)),
            scratch_shapes=[pltpu.VMEM((tm, tn), jnp.float32)]),
        compiler_params=_cparams(("parallel", "parallel", "arbitrary")),
    )(x, w, b)


def pl_qkv_proj(x, wqkv, bqkv, hidden, tm_target=512, tn_target=768,
                tk_target=768):
    """x:(M,K) bf16, wqkv:(K,3H) bf16 -> (3, M, H) bf16 slab (Q/K/V parts)."""
    M, K = x.shape
    N3 = wqkv.shape[1]
    H = hidden
    tm = _pick_tile(M, tm_target, (8,))
    tn = _pick_tile(H, tn_target)     # must divide H so part indexing is exact
    tk = _pick_tile(K, tk_target)
    jpp = H // tn                      # column blocks per Q/K/V part
    grid = (M // tm, N3 // tn, K // tk)
    return pl.pallas_call(
        _qkv_kernel,
        out_shape=jax.ShapeDtypeStruct((3, M, H), jnp.bfloat16),
        grid_spec=pltpu.PrefetchScalarGridSpec(
            num_scalar_prefetch=0, grid=grid,
            in_specs=[
                pl.BlockSpec((tm, tk), lambda i, j, k: (i, k)),
                pl.BlockSpec((tk, tn), lambda i, j, k: (k, j)),
                pl.BlockSpec((1, tn), lambda i, j, k: (0, j)),
            ],
            out_specs=pl.BlockSpec((1, tm, tn),
                                   lambda i, j, k: (j // jpp, i, j % jpp)),
            scratch_shapes=[pltpu.VMEM((tm, tn), jnp.float32)]),
        compiler_params=_cparams(("parallel", "parallel", "arbitrary")),
    )(x, wqkv, bqkv)


def pl_linear_res_ln(x, w, b, residual, gamma, beta, eps=1e-12,
                     tm_target=512, tk_target=768):
    M, K = x.shape
    N = w.shape[1]
    tm = _pick_tile(M, tm_target, (8,))
    tk = _pick_tile(K, tk_target)
    grid = (M // tm, K // tk)
    return pl.pallas_call(
        functools.partial(_linear_res_ln_kernel, eps=eps),
        out_shape=jax.ShapeDtypeStruct((M, N), jnp.bfloat16),
        grid_spec=pltpu.PrefetchScalarGridSpec(
            num_scalar_prefetch=0, grid=grid,
            in_specs=[
                pl.BlockSpec((tm, tk), lambda i, k: (i, k)),
                pl.BlockSpec((tk, N), lambda i, k: (k, 0)),
                pl.BlockSpec((1, N), lambda i, k: (0, 0)),
                pl.BlockSpec((tm, N), lambda i, k: (i, 0)),
                pl.BlockSpec((1, N), lambda i, k: (0, 0)),
                pl.BlockSpec((1, N), lambda i, k: (0, 0)),
            ],
            out_specs=pl.BlockSpec((tm, N), lambda i, k: (i, 0)),
            scratch_shapes=[pltpu.VMEM((tm, N), jnp.float32)]),
        compiler_params=_cparams(("parallel", "arbitrary")),
    )(x, w, b, residual, gamma, beta)


def pl_layernorm(x, gamma, beta, eps=1e-12, tm_target=512):
    M, D = x.shape
    tm = _pick_tile(M, tm_target, (8,))
    grid = (M // tm,)
    return pl.pallas_call(
        functools.partial(_layernorm_kernel, eps=eps),
        out_shape=jax.ShapeDtypeStruct((M, D), jnp.bfloat16),
        grid_spec=pltpu.PrefetchScalarGridSpec(
            num_scalar_prefetch=0, grid=grid,
            in_specs=[pl.BlockSpec((tm, D), lambda i: (i, 0)),
                      pl.BlockSpec((1, D), lambda i: (0, 0)),
                      pl.BlockSpec((1, D), lambda i: (0, 0))],
            out_specs=pl.BlockSpec((tm, D), lambda i: (i, 0))),
        compiler_params=_cparams(("parallel",)),
    )(x, gamma, beta)


def pl_flash_mha(qkv3, mbias, lens, n_heads, head_dim, batch, seq,
                 tq_target=128, tk_target=256):
    """qkv3: (3, B*S, H) bf16 slab; mbias: (B,1,S) f32; lens: (B,) int32.

    Returns the merged-head context directly as a lane-dense (B*S, H) bf16 slab.
    """
    H = n_heads * head_dim
    if H % 128 == 0 and 128 % head_dim == 0:
        dhb = 128                       # heads_per_block = 128 // head_dim
    else:
        dhb = H                         # small-model fallback: all heads at once
    n_hg = H // dhb
    tq = _pick_tile(seq, tq_target, (8,))
    tk = _pick_tile(seq, tk_target)
    nq, nk = seq // tq, seq // tk
    hpb = dhb // head_dim
    grid = (batch, n_hg, nq, nk)
    return pl.pallas_call(
        functools.partial(_flash_mha_kernel, dh=head_dim),
        out_shape=jax.ShapeDtypeStruct((batch * seq, H), jnp.bfloat16),
        grid_spec=pltpu.PrefetchScalarGridSpec(
            num_scalar_prefetch=1, grid=grid,
            in_specs=[
                pl.BlockSpec((1, tq, dhb),
                             lambda b, hg, qi, ki, lens: (0, b * nq + qi, hg)),
                pl.BlockSpec((1, tk, dhb),
                             lambda b, hg, qi, ki, lens: (1, b * nk + ki, hg)),
                pl.BlockSpec((1, tk, dhb),
                             lambda b, hg, qi, ki, lens: (2, b * nk + ki, hg)),
                pl.BlockSpec((1, 1, tk),
                             lambda b, hg, qi, ki, lens: (b, 0, ki)),
            ],
            out_specs=pl.BlockSpec((tq, dhb),
                                   lambda b, hg, qi, ki, lens: (b * nq + qi, hg)),
            scratch_shapes=[pltpu.VMEM((hpb, tq, 1), jnp.float32),
                            pltpu.VMEM((hpb, tq, 1), jnp.float32),
                            pltpu.VMEM((tq, dhb), jnp.float32)]),
        compiler_params=_cparams(("parallel", "parallel", "parallel",
                                  "arbitrary")),
    )(lens, qkv3, qkv3, qkv3, mbias)


def pl_pooler_classifier_loss(cls_tok, wp, bp, wc, bc, onehot):
    B, _ = cls_tok.shape
    L = wc.shape[1]
    return pl.pallas_call(
        _tail_kernel,
        out_shape=(jax.ShapeDtypeStruct((B, L), jnp.float32),
                   jax.ShapeDtypeStruct((1, 1), jnp.float32)),
        in_specs=[_vmem()] * 6,
        out_specs=(_vmem(), _vmem()),
    )(cls_tok, wp, bp, wc, bc, onehot)


# --------------------------- parameters ---------------------------------------

def init_params(key, vocab=100, hidden=32, heads=4, inter=64, n_layers=2,
                max_pos=64, max_2d=32, type_vocab=2, num_labels=4):
    keys = iter(jax.random.split(key, 64))

    def w(shape):
        return jax.random.normal(next(keys), shape, jnp.float32) * 0.02

    p = dict(
        num_heads=heads,
        word_emb=w((vocab, hidden)),
        pos_emb=w((max_pos, hidden)),
        x_pos_emb=w((max_2d, hidden)),
        y_pos_emb=w((max_2d, hidden)),
        h_pos_emb=w((max_2d, hidden)),
        w_pos_emb=w((max_2d, hidden)),
        type_emb=w((type_vocab, hidden)),
        emb_ln_g=jnp.ones((hidden,), jnp.float32),
        emb_ln_b=jnp.zeros((hidden,), jnp.float32),
        wp=w((hidden, hidden)), bp=jnp.zeros((hidden,), jnp.float32),
        wc=w((hidden, num_labels)), bc=jnp.zeros((num_labels,), jnp.float32),
        layers=[],
    )
    for _ in range(n_layers):
        p["layers"].append(dict(
            wq=w((hidden, hidden)), bq=jnp.zeros((hidden,), jnp.float32),
            wk=w((hidden, hidden)), bk=jnp.zeros((hidden,), jnp.float32),
            wv=w((hidden, hidden)), bv=jnp.zeros((hidden,), jnp.float32),
            wo=w((hidden, hidden)), bo=jnp.zeros((hidden,), jnp.float32),
            attn_ln_g=jnp.ones((hidden,), jnp.float32),
            attn_ln_b=jnp.zeros((hidden,), jnp.float32),
            w1=w((hidden, inter)), b1=jnp.zeros((inter,), jnp.float32),
            w2=w((inter, hidden)), b2=jnp.zeros((hidden,), jnp.float32),
            ffn_ln_g=jnp.ones((hidden,), jnp.float32),
            ffn_ln_b=jnp.zeros((hidden,), jnp.float32),
        ))
    return p


def prepare_params(raw):
    """One-time prep: fuse QKV weights, fold 1/sqrt(dh) into Wq/bq, pre-cast all
    matmul weights to bf16, pre-reshape biases / LN vectors.  Done once, so no
    per-forward HBM concat/cast traffic remains."""
    H = raw["word_emb"].shape[1]
    nH = raw["num_heads"]
    dh = H // nH
    scale = float(dh) ** -0.5

    p = dict(raw)
    p["head_dim"] = dh
    p["emb_ln_g"] = raw["emb_ln_g"].reshape(1, H)
    p["emb_ln_b"] = raw["emb_ln_b"].reshape(1, H)
    p["bp"] = raw["bp"].reshape(1, -1)
    p["bc"] = raw["bc"].reshape(1, -1)

    layers = []
    for lyr in raw["layers"]:
        wqkv = jnp.concatenate([lyr["wq"] * scale, lyr["wk"], lyr["wv"]], axis=1)
        bqkv = jnp.concatenate([lyr["bq"] * scale, lyr["bk"], lyr["bv"]], axis=0)
        layers.append(dict(
            wqkv=wqkv.astype(jnp.bfloat16),
            bqkv=bqkv.reshape(1, 3 * H).astype(jnp.float32),
            wo=lyr["wo"].astype(jnp.bfloat16),
            bo=lyr["bo"].reshape(1, H).astype(jnp.float32),
            attn_ln_g=lyr["attn_ln_g"].reshape(1, H),
            attn_ln_b=lyr["attn_ln_b"].reshape(1, H),
            w1=lyr["w1"].astype(jnp.bfloat16),
            b1=lyr["b1"].reshape(1, -1).astype(jnp.float32),
            w2=lyr["w2"].astype(jnp.bfloat16),
            b2=lyr["b2"].reshape(1, H).astype(jnp.float32),
            ffn_ln_g=lyr["ffn_ln_g"].reshape(1, H),
            ffn_ln_b=lyr["ffn_ln_b"].reshape(1, H),
        ))
    p["layers"] = layers
    return p


# --------------------------- model forward ------------------------------------

def layoutlm_forward(params, input_ids, bbox, attention_mask, token_type_ids,
                     labels):
    B, S = input_ids.shape
    H = params["word_emb"].shape[1]
    nH = params["num_heads"]
    dh = params["head_dim"]

    # --- embeddings (table gathers are plain-JAX glue) ---
    pos_ids = jnp.broadcast_to(jnp.arange(S)[None, :], (B, S))
    emb = (jnp.take(params["word_emb"], input_ids, axis=0)
           + jnp.take(params["pos_emb"], pos_ids, axis=0)
           + jnp.take(params["x_pos_emb"], bbox[..., 0], axis=0)
           + jnp.take(params["y_pos_emb"], bbox[..., 1], axis=0)
           + jnp.take(params["x_pos_emb"], bbox[..., 2], axis=0)
           + jnp.take(params["y_pos_emb"], bbox[..., 3], axis=0)
           + jnp.take(params["h_pos_emb"], bbox[..., 3] - bbox[..., 1], axis=0)
           + jnp.take(params["w_pos_emb"], bbox[..., 2] - bbox[..., 0], axis=0)
           + jnp.take(params["type_emb"], token_type_ids, axis=0))
    x = pl_layernorm(emb.reshape(B * S, H).astype(jnp.float32),
                     params["emb_ln_g"], params["emb_ln_b"])          # bf16

    # additive attention-mask bias (f32) and per-batch valid lengths (SMEM)
    mbias = ((1.0 - attention_mask.astype(jnp.float32)) * -1e9).reshape(B, 1, S)
    lens = jnp.sum(attention_mask, axis=1).astype(jnp.int32)

    for lyr in params["layers"]:
        # fused QKV projection -> (3, B*S, H) slab (scale pre-folded into Wq)
        qkv = pl_qkv_proj(x, lyr["wqkv"], lyr["bqkv"], H)
        # flash attention reads the slab directly and writes a lane-dense
        # (B*S, H) merged-head context -- no XLA transposes around attention.
        ctx = pl_flash_mha(qkv, mbias, lens, nH, dh, B, S)

        # output projection fused with residual-add + LayerNorm
        x = pl_linear_res_ln(ctx, lyr["wo"], lyr["bo"], x,
                             lyr["attn_ln_g"], lyr["attn_ln_b"])

        # FFN: up-proj + gelu, then down-proj fused with residual + LayerNorm
        h1 = pl_linear(x, lyr["w1"], lyr["b1"], act="gelu", tn_target=1024)
        x = pl_linear_res_ln(h1, lyr["w2"], lyr["b2"], x,
                             lyr["ffn_ln_g"], lyr["ffn_ln_b"])

    cls_tok = x.reshape(B, S, H)[:, 0, :]
    onehot = jax.nn.one_hot(labels, params["wc"].shape[1], dtype=jnp.float32)
    logits, loss = pl_pooler_classifier_loss(cls_tok, params["wp"], params["bp"],
                                             params["wc"], params["bc"], onehot)
    return loss[0, 0], logits


def do_good_forward(params, text=None, bbox=None, attention_mask=None,
                    image=None, labels=None, seg_ids=None, model="v1"):
    # TODO(synk): LayoutLMv2/v3 visual backbones (ResNet / ViT patch embed) are
    # not implemented; all model variants route through the text+layout path.
    del image  # v1 path is text + 2D layout only
    return layoutlm_forward(params, text, bbox, attention_mask, seg_ids, labels)


# --------------------------- main --------------------------------------------

if __name__ == "__main__":
    key = jax.random.PRNGKey(0)
    pkey, dkey = jax.random.split(key)
    params = prepare_params(init_params(pkey))

    B, S = 2, 8
    k1, k2, k3, k4 = jax.random.split(dkey, 4)
    input_ids = jax.random.randint(k1, (B, S), 0, 100, dtype=jnp.int32)
    xy0 = jax.random.randint(k2, (B, S, 2), 0, 16, dtype=jnp.int32)
    wh = jax.random.randint(k3, (B, S, 2), 0, 16, dtype=jnp.int32)
    bbox = jnp.concatenate([xy0, xy0 + wh], axis=-1)            # (x1,y1,x2,y2)
    attention_mask = jnp.ones((B, S), jnp.int32).at[:, S - 2:].set(0)
    seg_ids = jnp.zeros((B, S), jnp.int32)
    labels = jax.random.randint(k4, (B,), 0, 4, dtype=jnp.int32)
    image = jnp.zeros((B, 3, 16, 16), jnp.float32)               # NCHW, unused (v1)

    loss, logits = do_good_forward(params, text=input_ids, bbox=bbox,
                                   attention_mask=attention_mask, image=image,
                                   labels=labels, seg_ids=seg_ids, model="v1")
    jax.block_until_ready((loss, logits))
    assert logits.shape == (B, 4) and loss.shape == ()
    print("KERNEL_OK")
</pallas_src>

<mosaic_0001>
module attributes {stable_mosaic.version = 11 : i64} {
  func.func @_layernorm_kernel(%arg0: i32, %arg1: memref<16x32xf32, #tpu.memory_space<vmem>>, %arg2: memref<1x32xf32, #tpu.memory_space<vmem>>, %arg3: memref<1x32xf32, #tpu.memory_space<vmem>>, %arg4: memref<16x32xbf16, #tpu.memory_space<vmem>>) attributes {dimension_semantics = [#tpu.dimension_semantics<parallel>], iteration_bounds = array<i64: 1>, scalar_prefetch = 0 : i64, scratch_operands = 0 : i64, tpu.core_type = #tpu.core_type<tc>, window_params = [{transform_indices = @transform_0, window_bounds = array<i64: 16, 32>}, {pipeline_mode = #tpu.pipeline_mode<synchronous>, transform_indices = @transform_1, window_bounds = array<i64: 1, 32>}, {pipeline_mode = #tpu.pipeline_mode<synchronous>, transform_indices = @transform_2, window_bounds = array<i64: 1, 32>}, {transform_indices = @transform_3, window_bounds = array<i64: 16, 32>}]} {
    %c0 = arith.constant 0 : index
    %c0_0 = arith.constant 0 : index
    %0 = vector.load %arg1[%c0, %c0_0] : memref<16x32xf32, #tpu.memory_space<vmem>>, vector<16x32xf32>
    %cst = arith.constant dense<0.000000e+00> : vector<16xf32>
    %1 = vector.multi_reduction <add>, %0, %cst [1] : vector<16x32xf32> to vector<16xf32>
    %2 = vector.shape_cast %1 : vector<16xf32> to vector<16x1xf32>
    %cst_1 = arith.constant 3.200000e+01 : f32
    %3 = vector.broadcast %cst_1 : f32 to vector<16x1xf32>
    %4 = arith.divf %2, %3 : vector<16x1xf32>
    %5 = vector.broadcast %4 : vector<16x1xf32> to vector<16x32xf32>
    %6 = arith.subf %0, %5 : vector<16x32xf32>
    %7 = arith.mulf %6, %6 : vector<16x32xf32>
    %cst_2 = arith.constant dense<0.000000e+00> : vector<16xf32>
    %8 = vector.multi_reduction <add>, %7, %cst_2 [1] : vector<16x32xf32> to vector<16xf32>
    %9 = vector.shape_cast %8 : vector<16xf32> to vector<16x1xf32>
    %cst_3 = arith.constant 3.200000e+01 : f32
    %10 = vector.broadcast %cst_3 : f32 to vector<16x1xf32>
    %11 = arith.divf %9, %10 : vector<16x1xf32>
    %12 = vector.broadcast %4 : vector<16x1xf32> to vector<16x32xf32>
    %13 = arith.subf %0, %12 : vector<16x32xf32>
    %cst_4 = arith.constant 9.99999996E-13 : f32
    %14 = vector.broadcast %cst_4 : f32 to vector<16x1xf32>
    %15 = arith.addf %11, %14 : vector<16x1xf32>
    %16 = math.rsqrt %15 : vector<16x1xf32>
    %17 = vector.broadcast %16 : vector<16x1xf32> to vector<16x32xf32>
    %18 = arith.mulf %13, %17 : vector<16x32xf32>
    %c0_5 = arith.constant 0 : index
    %c0_6 = arith.constant 0 : index
    %19 = vector.load %arg2[%c0_5, %c0_6] : memref<1x32xf32, #tpu.memory_space<vmem>>, vector<1x32xf32>
    %20 = vector.broadcast %19 : vector<1x32xf32> to vector<16x32xf32>
    %21 = arith.mulf %18, %20 : vector<16x32xf32>
    %c0_7 = arith.constant 0 : index
    %c0_8 = arith.constant 0 : index
    %22 = vector.load %arg3[%c0_7, %c0_8] : memref<1x32xf32, #tpu.memory_space<vmem>>, vector<1x32xf32>
    %23 = vector.broadcast %22 : vector<1x32xf32> to vector<16x32xf32>
    %24 = arith.addf %21, %23 : vector<16x32xf32>
    %25 = arith.truncf %24 : vector<16x32xf32> to vector<16x32xbf16>
    %c0_9 = arith.constant 0 : index
    %c0_10 = arith.constant 0 : index
    %26 = vector.load %arg4[%c0_9, %c0_10] : memref<16x32xbf16, #tpu.memory_space<vmem>>, vector<16x32xbf16>
    tpu.vector_store %arg4[%c0_9, %c0_10], %25 {strides = array<i32>} : memref<16x32xbf16, #tpu.memory_space<vmem>>, vector<16x32xbf16>,
    return
  }
  func.func @transform_0(%arg0: i32) -> (i32, i32) {
    %c0_i32 = arith.constant 0 : i32
    %c0_i32_0 = arith.constant 0 : i32
    return %arg0, %c0_i32 : i32, i32
  }
  func.func @transform_1(%arg0: i32) -> (i32, i32) {
    %c0_i32 = arith.constant 0 : i32
    %c0_i32_0 = arith.constant 0 : i32
    %c0_i32_1 = arith.constant 0 : i32
    return %c0_i32, %c0_i32_0 : i32, i32
  }
  func.func @transform_2(%arg0: i32) -> (i32, i32) {
    %c0_i32 = arith.constant 0 : i32
    %c0_i32_0 = arith.constant 0 : i32
    %c0_i32_1 = arith.constant 0 : i32
    return %c0_i32, %c0_i32_0 : i32, i32
  }
  func.func @transform_3(%arg0: i32) -> (i32, i32) {
    %c0_i32 = arith.constant 0 : i32
    %c0_i32_0 = arith.constant 0 : i32
    return %arg0, %c0_i32 : i32, i32
  }
}

</mosaic_0001>

<bundles_post_ra>
// kernel: tpu_custom_call.1
= control target key start
LH: loop header
LB: loop body
LE: loop exit
PB: predicated region body
PF: predicated region fallthrough
CT: control target
= control target key end

     0   :  { %8 = vsyncpa [#allocation3], 0  ;;  %s229_s0 = inlined_call_operand.hbm [shape: f32[16,32], index: 0, kind: input, shape index: {}]   ;;  %s230_s1 = inlined_call_operand.vmem [shape: f32[1,32], index: 1, kind: input, shape index: {}]   ;;  %s231_s2 = inlined_call_operand.vmem [shape: f32[1,32], index: 2, kind: input, shape index: {}]   ;;  %s232_s3 = inlined_call_operand.hbm [shape: bf16[16,32], index: 3, kind: output, shape index: {}]  }
   0x1   :  { %9 = vsyncpa [#allocation4], 0  ;;  %s169_s12 = smov [#allocation2]   ;;  %s121_s16 = scalar_lea.hbm %s229_s0, 256 }
   0x2   :  { %s15_s13 = sshll.u32 %s169_s12, 4  ;;  %p122_p0 = scmp.ne.s32.totalorder %s229_s0, %s121_s16  ;;  %s16_s13 = int_to_ptr.vmem [resolvable:$true] %s15_s13 }
   0x3   :  { %p125_p1 = scmp.lt.u32.totalorder %s121_s16, %s229_s0 }
   0x5   :  { %p127_p2 = pnand %p125_p1, %p122_p0 }
   0x7   :  { %130 = shalt.err (!%p127_p2)
}
   0x8   :  { %s131_s21 = scalar_lea.vmem %s16_s13, 256  ;;  %p136_p4 = scmp.lt.s32.totalorder %s16_s13, %s16_s13 }
   0x9   :  { %p132_p3 = scmp.ne.s32.totalorder %s16_s13, %s131_s21  ;;  %p137_p5 = scmp.lt.s32.totalorder %s131_s21, %s131_s21 }
   0xb   :  { %p138_p6 = por %p137_p5, %p136_p4 }
   0xd   :  { %p139_p7 = pnand %p138_p6, %p132_p3 }
   0xf   :  { %142 = shalt.err (!%p139_p7)
}
  0x10   :  { %s170_s22 = smov 128   ;;  %s171_s23 = smov 8  }
  0x11   :  { %21 = dma.hbm_to_vmem [thread:$0]  %s229_s0, 256, %s16_s13, [#allocation3], %s170_s22, %s170_s22, %s171_s23  }
  0x12   :  { %165 = dma.done.wait [#allocation3], 256  }
  0x13   :  { %166 = vsyncadd [#allocation3], 4294967040  ;;  %vm31_vm0 = vcmask 261120   ;;  %v29_v0 = vld [vmem:[#allocation2] sm:$0xff]  ;;  %v30_v1 = vld [vmem:[#allocation2 + $0x8] sm:$0xff]  ;;  %vm85_vm1 = vcmask 257024  }
  0x14   :  { %v32_v2 = vsel %vm31_vm0, %v29_v0, 0.0  ;;  %v35_v3 = vsel %vm31_vm0, %v30_v1, 0.0  ;;  %v105_v21 = vld [vmem:[%s230_s1] ss:$0 sm:$0xff]  ;;  %s172_s29 = smov [#allocation5]  }
  0x15   :  { %33 = vadd.xlane.f32.xlu0 %v32_v2  ;;  %v106_v23 = vld [vmem:[%s231_s2] ss:$0 sm:$0xff]  ;;  %s93_s30 = sshll.u32 %s172_s29, 4  ;;  %s94_s30 = int_to_ptr.vmem [resolvable:$true] %s93_s30 }
  0x16   :  { %s143_s1 = scalar_lea.vmem %s94_s30, 128  ;;  %p148_p9 = scmp.lt.s32.totalorder %s94_s30, %s94_s30 }
  0x17   :  { %p144_p8 = scmp.ne.s32.totalorder %s94_s30, %s143_s1  ;;  %p149_p10 = scmp.lt.s32.totalorder %s143_s1, %s143_s1 }
  0x19   :  { %36 = vadd.xlane.f32.xlu0 %v35_v3  ;;  %p150_p11 = por %p149_p10, %p148_p9 }
  0x1b   :  { %p151_p12 = pnand %p150_p11, %p144_p8 }
  0xa2   :  { %v34_v4 = vpop.xlane.xlu0 %33 }
  0xa3   :  { %v39_v5 = vmul.f32 0.03125, %v34_v4 }
  0xa5   :  { %v41_v6 = vsub.f32 %v29_v0, %v39_v5 }
  0xa6   :  { %v37_v7 = vpop.xlane.xlu0 %36 }
  0xa7   :  { %v40_v8 = vmul.f32 0.03125, %v37_v7  ;;  %v43_v9 = vmul.f32 %v41_v6, %v41_v6 }
  0xa9   :  { %v42_v10 = vsub.f32 %v30_v1, %v40_v8  ;;  %v45_v11 = vsel %vm31_vm0, %v43_v9, 0.0 }
  0xaa   :  { %46 = vadd.xlane.f32.xlu1 %v45_v11 }
  0xab   :  { %v44_v12 = vmul.f32 %v42_v10, %v42_v10 }
  0xad   :  { %v48_v13 = vsel %vm31_vm0, %v44_v12, 0.0 }
  0xae   :  { %49 = vadd.xlane.f32.xlu1 %v48_v13 }
 0x137   :  { %v47_v14 = vpop.xlane.xlu1 %46 }
 0x138   :  { %v51_v15 = vmul.f32 0.03125, %v47_v14 }
 0x13a   :  { %v53_v16 = vadd.f32 1e-12, %v51_v15 }
 0x13b   :  { %v50_v17 = vpop.xlane.xlu1 %49 }
 0x13c   :  { %117 = vrsqrt.f32 %v53_v16  ;;  %v52_v18 = vmul.f32 0.03125, %v50_v17 }
 0x13e   :  { %v54_v19 = vadd.f32 1e-12, %v52_v18 }
 0x140   :  { %119 = vrsqrt.f32 %v54_v19 }
 0x146   :  { %v118_v20 = vpop.eup %117 }
 0x147   :  { %v57_v22 = vmul.f32 %v118_v20, %v41_v6 }
 0x149   :  { %v66_v24 = vmul.f32 %v105_v21, %v57_v22 }
 0x14a   :  { %v120_v25 = vpop.eup %119 }
 0x14b   :  { %v58_v26 = vmul.f32 %v120_v25, %v42_v10  ;;  %v75_v27 = vadd.f32 %v106_v23, %v66_v24 }
 0x14d   :  { %v67_v28 = vmul.f32 %v105_v21, %v58_v26  ;;  %v109_v29 = vpack.c.bf16 %v75_v27, %v75_v27 }
 0x14f   :  { %v76_v30 = vadd.f32 %v106_v23, %v67_v28  ;;  %86 = vst.msk [vmem:[#allocation5] sm:$0xf] %vm85_vm1, %v109_v29 }
 0x151   :  { %v110_v31 = vpack.c.bf16 %v76_v30, %v76_v30 }
 0x153   :  { %87 = vst.msk [vmem:[#allocation5 + $0x4] sm:$0xf] %vm85_vm1, %v110_v31 }
 0x154   :  { %154 = shalt.err (!%p151_p12)
}
 0x155   :  { %s155_s5 = scalar_lea.hbm %s232_s3, 128 }
 0x156   :  { %p156_p13 = scmp.ne.s32.totalorder %s232_s3, %s155_s5  ;;  %p159_p0 = scmp.lt.u32.totalorder %s155_s5, %s232_s3 }
 0x158   :  { %p161_p1 = pnand %p159_p0, %p156_p13 }
 0x15a   :  { %164 = shalt.err (!%p161_p1)
}
 0x15b   :  { %s173_s10 = smov 64   ;;  %s174_s11 = smov 4  }
 0x15c   :  { %99 = dma.vmem_to_hbm [thread:$0]  %s94_s30, 128, %s232_s3, [#allocation4], %s173_s10, %s173_s10, %s174_s11  }
 0x15d   :  { %167 = dma.done.wait [#allocation4], 128  }
 0x15e   :  { %168 = vsyncadd [#allocation4], 4294967168 }
 0x15f   :  { %103 = vsyncpa [#allocation3], 1 }
 0x160   :  { %104 = vsyncpa [#allocation4], 1 }

</bundles_post_ra>
